<compile_context>
chip_gen: v5e
topology: v5e:2x2
jax: 0.10.0
libtpu: 0.0.40
codegen_flags: <defaults>
</compile_context>

<pallas_src>
import functools

import jax
import jax.numpy as jnp
from jax import lax
from jax.experimental import pallas as pl
from jax.experimental.pallas import tpu as pltpu

_SQRT_HALF = 0.7071067811865476


def _mlp_block_kernel(x_ref, w1_ref, b1_ref, w2_ref, b2_ref, o_ref, acc_ref):
    # x_ref : (tm, d_x)   row tile of the input (native dtype)
    # w1_ref: (d_x, tk)   k-th column tile of W1
    # b1_ref: (1, tk)
    # w2_ref: (tk, d_x)   k-th row tile of W2
    # b2_ref: (1, d_x)
    # o_ref : (tm, d_x)
    # acc_ref: (tm, d_x)  f32 scratch accumulator, persistent across the k axis
    k = pl.program_id(1)

    @pl.when(k == 0)
    def _():
        acc_ref[...] = jnp.zeros_like(acc_ref)

    # First matmul: native-dtype operands on the MXU, f32 accumulation.
    h = jnp.dot(x_ref[...], w1_ref[...], preferred_element_type=jnp.float32)
    h = h + b1_ref[...].astype(jnp.float32)
    # Exact GELU: 0.5*h*(1+erf(h/sqrt(2)))  == torch.nn.GELU() default.
    # (d_x is not tiled, so each hidden tile sees its *full* pre-activation.)
    h = 0.5 * h * (1.0 + lax.erf(h * jnp.float32(_SQRT_HALF)))

    # Second matmul: cast activations back to the param dtype so the MXU runs
    # at native (e.g. bf16) rate; accumulate partial products in f32.
    acc_ref[...] += jnp.dot(h.astype(w2_ref.dtype), w2_ref[...],
                            preferred_element_type=jnp.float32)

    @pl.when(k == pl.num_programs(1) - 1)
    def _():
        y = acc_ref[...] + b2_ref[...].astype(jnp.float32)
        o_ref[...] = y.astype(o_ref.dtype)


def _spec(shape, index_map, single_buffer=False):
    """BlockSpec helper; single-buffers constant-index blocks when supported."""
    if single_buffer and hasattr(pl, "Buffered"):
        try:
            return pl.BlockSpec(shape, index_map,
                                pipeline_mode=pl.Buffered(buffer_count=1))
        except TypeError:
            pass
    return pl.BlockSpec(shape, index_map)


def _pick_hidden_tile(d_mlp, tk):
    # The hidden tile must divide d_mlp exactly (a ragged k tile would feed
    # garbage into the accumulator); otherwise fall back to one full tile.
    for cand in (tk, 512, 256, 128):
        if 0 < cand <= d_mlp and d_mlp % cand == 0:
            return cand
    return d_mlp


@functools.partial(jax.jit, static_argnames=("tm", "tk"))
def mlp_block(x, w1, b1, w2, b2, *, tm=256, tk=512):
    """y = gelu(x @ w1 + b1) @ w2 + b2 over the last axis of x."""
    orig_shape = x.shape
    d_x = orig_shape[-1]
    d_mlp = w1.shape[1]

    x2d = x.reshape(-1, d_x)
    m = x2d.shape[0]

    # Row tile: keep it a multiple of the sublane packing; clamp for tiny M.
    row_align = 8 if x2d.dtype.itemsize == 4 else 16
    tm_eff = min(tm, pl.cdiv(m, row_align) * row_align)
    n_rows = pl.cdiv(m, tm_eff)          # ragged last row tile handled by Pallas

    tk_eff = _pick_hidden_tile(d_mlp, tk)
    n_k = d_mlp // tk_eff

    b1_2d = b1.reshape(1, d_mlp)
    b2_2d = b2.reshape(1, d_x)

    nbytes = lambda a: a.size * a.dtype.itemsize
    cost = pl.CostEstimate(
        flops=2 * 2 * m * d_x * d_mlp,               # two matmuls
        transcendentals=m * d_mlp,                   # erf
        bytes_accessed=(2 * nbytes(x2d)              # read x, write y
                        + n_rows * (nbytes(w1) + nbytes(b1)
                                    + nbytes(w2) + nbytes(b2))),
    )

    out = pl.pallas_call(
        _mlp_block_kernel,
        out_shape=jax.ShapeDtypeStruct((m, d_x), x.dtype),
        grid_spec=pltpu.PrefetchScalarGridSpec(
            num_scalar_prefetch=0,
            grid=(n_rows, n_k),
            in_specs=[
                pl.BlockSpec((tm_eff, d_x), lambda i, k: (i, 0)),        # x rows
                _spec((d_x, tk_eff), lambda i, k: (0, k), n_k == 1),     # W1 tile
                _spec((1, tk_eff), lambda i, k: (0, k), n_k == 1),       # b1 tile
                _spec((tk_eff, d_x), lambda i, k: (k, 0), n_k == 1),     # W2 tile
                _spec((1, d_x), lambda i, k: (0, 0), True),              # b2
            ],
            out_specs=pl.BlockSpec((tm_eff, d_x), lambda i, k: (i, 0)),
            scratch_shapes=[pltpu.VMEM((tm_eff, d_x), jnp.float32)],
        ),
        compiler_params=pltpu.CompilerParams(
            dimension_semantics=("parallel", "arbitrary"),
            vmem_limit_bytes=64 * 1024 * 1024,
        ),
        cost_estimate=cost,
    )(x2d, w1, b1_2d, w2, b2_2d)

    return out.reshape(orig_shape)


def init_mlp_block_params(key, d_x, d_mlp, dtype=jnp.float32):
    """nn.Linear-style init; weights stored (in, out) so the kernel does x @ W."""
    k1, k2, k3, k4 = jax.random.split(key, 4)
    lim1 = 1.0 / float(d_x) ** 0.5
    lim2 = 1.0 / float(d_mlp) ** 0.5
    w1 = jax.random.uniform(k1, (d_x, d_mlp), dtype, -lim1, lim1)
    b1 = jax.random.uniform(k2, (d_mlp,), dtype, -lim1, lim1)
    w2 = jax.random.uniform(k3, (d_mlp, d_x), dtype, -lim2, lim2)
    b2 = jax.random.uniform(k4, (d_x,), dtype, -lim2, lim2)
    return w1, b1, w2, b2


if __name__ == "__main__":
    key = jax.random.PRNGKey(0)
    kx, kp = jax.random.split(key)

    # Small but lane-dense shapes (d_x multiple of 128 per perf review).
    batch, seq, d_x, d_mlp = 2, 8, 128, 256
    x = jax.random.normal(kx, (batch, seq, d_x), jnp.float32)
    w1, b1, w2, b2 = init_mlp_block_params(kp, d_x, d_mlp, jnp.float32)

    def reference(xx):
        h = xx @ w1 + b1
        h = 0.5 * h * (1.0 + lax.erf(h * _SQRT_HALF))
        return h @ w2 + b2

    # 1) single hidden tile (n_k == 1): weights fully resident, single-buffered
    y1 = jax.block_until_ready(mlp_block(x, w1, b1, w2, b2))
    # 2) tiled hidden dim (n_k == 2): exercises the f32 accumulator path
    y2 = jax.block_until_ready(mlp_block(x, w1, b1, w2, b2, tk=128))
    # 3) ragged row count (M = 15 not a multiple of the row tile)
    x3 = jax.random.normal(kx, (3, 5, d_x), jnp.float32)
    y3 = jax.block_until_ready(mlp_block(x3, w1, b1, w2, b2, tm=8))

    y_ref = reference(x)
    assert y1.shape == x.shape
    assert jnp.allclose(y1, y_ref, atol=1e-4, rtol=1e-4)
    assert jnp.allclose(y2, y_ref, atol=1e-4, rtol=1e-4)
    assert jnp.allclose(y3, reference(x3), atol=1e-4, rtol=1e-4)

    print("KERNEL_OK")
</pallas_src>

<mosaic_0001>
module attributes {stable_mosaic.version = 11 : i64} {
  func.func @_mlp_block_kernel(%arg0: i32, %arg1: i32, %arg2: memref<16x128xf32, #tpu.memory_space<vmem>>, %arg3: memref<128x256xf32, #tpu.memory_space<vmem>>, %arg4: memref<1x256xf32, #tpu.memory_space<vmem>>, %arg5: memref<256x128xf32, #tpu.memory_space<vmem>>, %arg6: memref<1x128xf32, #tpu.memory_space<vmem>>, %arg7: memref<16x128xf32, #tpu.memory_space<vmem>>, %arg8: memref<16x128xf32, #tpu.memory_space<vmem>>) attributes {dimension_semantics = [#tpu.dimension_semantics<parallel>, #tpu.dimension_semantics<arbitrary>], iteration_bounds = array<i64: 1, 1>, scalar_prefetch = 0 : i64, scratch_operands = 1 : i64, tpu.core_type = #tpu.core_type<tc>, window_params = [{transform_indices = @transform_0, window_bounds = array<i64: 16, 128>}, {pipeline_mode = #tpu.pipeline_mode<synchronous>, transform_indices = @transform_1, window_bounds = array<i64: 128, 256>}, {pipeline_mode = #tpu.pipeline_mode<synchronous>, transform_indices = @transform_2, window_bounds = array<i64: 1, 256>}, {pipeline_mode = #tpu.pipeline_mode<synchronous>, transform_indices = @transform_3, window_bounds = array<i64: 256, 128>}, {pipeline_mode = #tpu.pipeline_mode<synchronous>, transform_indices = @transform_4, window_bounds = array<i64: 1, 128>}, {transform_indices = @transform_5, window_bounds = array<i64: 16, 128>}]} {
    %c0_i32 = arith.constant 0 : i32
    %0 = arith.cmpi eq, %arg1, %c0_i32 : i32
    %1 = arith.extui %0 : i1 to i32
    %c0_i32_0 = arith.constant 0 : i32
    %2 = arith.cmpi ne, %1, %c0_i32_0 : i32
    scf.if %2 {
      %cst_18 = arith.constant 0.000000e+00 : f32
      %25 = vector.broadcast %cst_18 : f32 to vector<16x128xf32>
      %c0_19 = arith.constant 0 : index
      %c0_20 = arith.constant 0 : index
      %26 = vector.load %arg8[%c0_19, %c0_20] : memref<16x128xf32, #tpu.memory_space<vmem>>, vector<16x128xf32>
      tpu.vector_store %arg8[%c0_19, %c0_20], %25 {strides = array<i32>} : memref<16x128xf32, #tpu.memory_space<vmem>>, vector<16x128xf32>,
    } else {
    }
    %c0 = arith.constant 0 : index
    %c0_1 = arith.constant 0 : index
    %3 = vector.load %arg2[%c0, %c0_1] : memref<16x128xf32, #tpu.memory_space<vmem>>, vector<16x128xf32>
    %c0_2 = arith.constant 0 : index
    %c0_3 = arith.constant 0 : index
    %4 = vector.load %arg3[%c0_2, %c0_3] : memref<128x256xf32, #tpu.memory_space<vmem>>, vector<128x256xf32>
    %cst = arith.constant dense<0.000000e+00> : vector<16x256xf32>
    %5 = tpu.matmul %3, %4, %cst {dimension_numbers = #tpu.dot_dimension_numbers<[1], [0], [0], [1], [0, 0, 1, 1], [], []>} : vector<16x128xf32>, vector<128x256xf32>, vector<16x256xf32> -> vector<16x256xf32>
    %c0_4 = arith.constant 0 : index
    %c0_5 = arith.constant 0 : index
    %6 = vector.load %arg4[%c0_4, %c0_5] : memref<1x256xf32, #tpu.memory_space<vmem>>, vector<1x256xf32>
    %7 = vector.broadcast %6 : vector<1x256xf32> to vector<16x256xf32>
    %8 = arith.addf %5, %7 : vector<16x256xf32>
    %cst_6 = arith.constant 5.000000e-01 : f32
    %9 = vector.broadcast %cst_6 : f32 to vector<16x256xf32>
    %10 = arith.mulf %9, %8 : vector<16x256xf32>
    %cst_7 = arith.constant 0.707106769 : f32
    %11 = vector.broadcast %cst_7 : f32 to vector<16x256xf32>
    %12 = arith.mulf %8, %11 : vector<16x256xf32>
    %13 = math.erf %12 : vector<16x256xf32>
    %cst_8 = arith.constant 1.000000e+00 : f32
    %14 = vector.broadcast %cst_8 : f32 to vector<16x256xf32>
    %15 = arith.addf %14, %13 : vector<16x256xf32>
    %16 = arith.mulf %10, %15 : vector<16x256xf32>
    %c0_9 = arith.constant 0 : index
    %c0_10 = arith.constant 0 : index
    %17 = vector.load %arg8[%c0_9, %c0_10] : memref<16x128xf32, #tpu.memory_space<vmem>>, vector<16x128xf32>
    %c0_11 = arith.constant 0 : index
    %c0_12 = arith.constant 0 : index
    %18 = vector.load %arg5[%c0_11, %c0_12] : memref<256x128xf32, #tpu.memory_space<vmem>>, vector<256x128xf32>
    %cst_13 = arith.constant dense<0.000000e+00> : vector<16x128xf32>
    %19 = tpu.matmul %16, %18, %cst_13 {dimension_numbers = #tpu.dot_dimension_numbers<[1], [0], [0], [1], [0, 0, 1, 1], [], []>} : vector<16x256xf32>, vector<256x128xf32>, vector<16x128xf32> -> vector<16x128xf32>
    %20 = arith.addf %17, %19 : vector<16x128xf32>
    %c0_14 = arith.constant 0 : index
    %c0_15 = arith.constant 0 : index
    %21 = vector.load %arg8[%c0_14, %c0_15] : memref<16x128xf32, #tpu.memory_space<vmem>>, vector<16x128xf32>
    tpu.vector_store %arg8[%c0_14, %c0_15], %20 {strides = array<i32>} : memref<16x128xf32, #tpu.memory_space<vmem>>, vector<16x128xf32>,
    %c0_i32_16 = arith.constant 0 : i32
    %22 = arith.cmpi eq, %arg1, %c0_i32_16 : i32
    %23 = arith.extui %22 : i1 to i32
    %c0_i32_17 = arith.constant 0 : i32
    %24 = arith.cmpi ne, %23, %c0_i32_17 : i32
    scf.if %24 {
      %c0_18 = arith.constant 0 : index
      %c0_19 = arith.constant 0 : index
      %25 = vector.load %arg8[%c0_18, %c0_19] : memref<16x128xf32, #tpu.memory_space<vmem>>, vector<16x128xf32>
      %c0_20 = arith.constant 0 : index
      %c0_21 = arith.constant 0 : index
      %26 = vector.load %arg6[%c0_20, %c0_21] : memref<1x128xf32, #tpu.memory_space<vmem>>, vector<1x128xf32>
      %27 = vector.broadcast %26 : vector<1x128xf32> to vector<16x128xf32>
      %28 = arith.addf %25, %27 : vector<16x128xf32>
      %c0_22 = arith.constant 0 : index
      %c0_23 = arith.constant 0 : index
      %29 = vector.load %arg7[%c0_22, %c0_23] : memref<16x128xf32, #tpu.memory_space<vmem>>, vector<16x128xf32>
      tpu.vector_store %arg7[%c0_22, %c0_23], %28 {strides = array<i32>} : memref<16x128xf32, #tpu.memory_space<vmem>>, vector<16x128xf32>,
    } else {
    }
    return
  }
  func.func @transform_0(%arg0: i32, %arg1: i32) -> (i32, i32) {
    %c0_i32 = arith.constant 0 : i32
    %c0_i32_0 = arith.constant 0 : i32
    return %arg0, %c0_i32 : i32, i32
  }
  func.func @transform_1(%arg0: i32, %arg1: i32) -> (i32, i32) {
    %c0_i32 = arith.constant 0 : i32
    %c0_i32_0 = arith.constant 0 : i32
    return %c0_i32, %arg1 : i32, i32
  }
  func.func @transform_2(%arg0: i32, %arg1: i32) -> (i32, i32) {
    %c0_i32 = arith.constant 0 : i32
    %c0_i32_0 = arith.constant 0 : i32
    return %c0_i32, %arg1 : i32, i32
  }
  func.func @transform_3(%arg0: i32, %arg1: i32) -> (i32, i32) {
    %c0_i32 = arith.constant 0 : i32
    %c0_i32_0 = arith.constant 0 : i32
    return %arg1, %c0_i32 : i32, i32
  }
  func.func @transform_4(%arg0: i32, %arg1: i32) -> (i32, i32) {
    %c0_i32 = arith.constant 0 : i32
    %c0_i32_0 = arith.constant 0 : i32
    %c0_i32_1 = arith.constant 0 : i32
    return %c0_i32, %c0_i32_0 : i32, i32
  }
  func.func @transform_5(%arg0: i32, %arg1: i32) -> (i32, i32) {
    %c0_i32 = arith.constant 0 : i32
    %c0_i32_0 = arith.constant 0 : i32
    return %arg0, %c0_i32 : i32, i32
  }
}

</mosaic_0001>

<bundles_post_ra>
// kernel: mlp_block.1
= control target key start
LH: loop header
LB: loop body
LE: loop exit
PB: predicated region body
PF: predicated region fallthrough
CT: control target
= control target key end

     0   :  { %10 = vsyncpa [#allocation4], 0  ;;  %s739_s0 = inlined_call_operand.hbm [shape: f32[16,128], index: 0, kind: input, shape index: {}]   ;;  %s740_s1 = inlined_call_operand.hbm [shape: f32[128,256], index: 1, kind: input, shape index: {}]   ;;  %s741_s2 = inlined_call_operand.vmem [shape: f32[1,256], index: 2, kind: input, shape index: {}]   ;;  %s742_s3 = inlined_call_operand.hbm [shape: f32[256,128], index: 3, kind: input, shape index: {}]   ;;  %s743_s4 = inlined_call_operand.vmem [shape: f32[1,128], index: 4, kind: input, shape index: {}]   ;;  %s744_s5 = inlined_call_operand.hbm [shape: f32[16,128], index: 5, kind: output, shape index: {}]  }
   0x1   :  { %11 = vsyncpa [#allocation7], 0  ;;  %s30_s20 = sshll.u32 %s740_s1, 4  ;;  %s31_s20 = int_to_ptr.hbm [resolvable:$true] %s30_s20 }
   0x2   :  { %12 = vsyncpa [#allocation5], 0  ;;  %s576_s21 = smov [#allocation6]   ;;  %s17_s25 = sshll.u32 %s739_s0, 4  ;;  %s18_s25 = int_to_ptr.hbm [resolvable:$true] %s17_s25 }
   0x3   :  { %s32_s22 = sshll.u32 %s576_s21, 4  ;;  %s577_s26 = smov 256   ;;  %s33_s22 = int_to_ptr.vmem [resolvable:$true] %s32_s22 }
   0x4   :  { %s578_s27 = smov 16   ;;  %s579_s28 = smov [#allocation3]  }
   0x5   :  { %38 = dma.hbm_to_vmem [thread:$0]  %s31_s20, 4096, %s33_s22, [#allocation7], %s577_s26, %s577_s26, %s578_s27  }
   0x6   :  { %s19_s29 = sshll.u32 %s579_s28, 4  ;;  %s580_s30 = smov 128   ;;  %s20_s29 = int_to_ptr.vmem [resolvable:$true] %s19_s29 }
   0x7   :  { %s581_s6 = smov 8   ;;  %s45_s8 = sshll.u32 %s742_s3, 4  ;;  %s46_s8 = int_to_ptr.hbm [resolvable:$true] %s45_s8 }
   0x8   :  { %25 = dma.hbm_to_vmem [thread:$0]  %s18_s25, 256, %s20_s29, [#allocation4], %s580_s30, %s580_s30, %s581_s6  }
   0x9   :  { %s582_s9 = smov [#allocation8]  }
   0xa   :  { %s47_s0 = sshll.u32 %s582_s9, 4  ;;  %s48_s0 = int_to_ptr.vmem [resolvable:$true] %s47_s0 }
   0xb   :  { %53 = dma.hbm_to_vmem [thread:$0]  %s46_s8, 4096, %s48_s0, [#allocation7], %s580_s30, %s580_s30, %s581_s6  }
   0xc   :  { %570 = dma.done.wait [#allocation4], 256  }
   0xd   :  { %571 = vsyncadd [#allocation4], 4294967040 }
   0xe   :  { %572 = dma.done.wait [#allocation7], 8192  }
   0xf   :  { %573 = vsyncadd [#allocation7], 4294959104  ;;  %v106_v0 = vld [vmem:[#allocation6 + $0xf0] sm:$0xff]  ;;  %v107_v1 = vld [vmem:[#allocation6 + $0xf8] sm:$0xff]  ;;  %s583_s12 = smov [#allocation9]   ;;  %s439_s16 = sshll.u32 %s744_s5, 4  ;;  %s440_s16 = int_to_ptr.hbm [resolvable:$true] %s439_s16 }
  0x10   :  { %v104_v2 = vld [vmem:[#allocation6 + $0xe0] sm:$0xff]  ;;  %114 = vmatpush.msra.mxu0 %v106_v0  ;;  %137 = vmatpush.msra.mxu1 %v107_v1  ;;  %v105_v3 = vld [vmem:[#allocation6 + $0xe8] sm:$0xff]  ;;  %v102_v4 = vld [vmem:[#allocation6 + $0xd0] sm:$0xff]  ;;  %s437_s13 = sshll.u32 %s583_s12, 4  ;;  %s438_s13 = int_to_ptr.vmem [resolvable:$true] %s437_s13 }
  0x11   :  { %v103_v5 = vld [vmem:[#allocation6 + $0xd8] sm:$0xff]  ;;  %v100_v6 = vld [vmem:[#allocation6 + $0xc0] sm:$0xff]  ;;  %v101_v7 = vld [vmem:[#allocation6 + $0xc8] sm:$0xff] }
  0x12   :  { %115 = vmatpush.msra.mxu0 %v104_v2  ;;  %138 = vmatpush.msra.mxu1 %v105_v3  ;;  %v98_v8 = vld [vmem:[#allocation6 + $0xb0] sm:$0xff]  ;;  %v99_v9 = vld [vmem:[#allocation6 + $0xb8] sm:$0xff]  ;;  %v96_v10 = vld [vmem:[#allocation6 + $0xa0] sm:$0xff] }
  0x13   :  { %v97_v11 = vld [vmem:[#allocation6 + $0xa8] sm:$0xff]  ;;  %v94_v12 = vld [vmem:[#allocation6 + $0x90] sm:$0xff]  ;;  %v95_v13 = vld [vmem:[#allocation6 + $0x98] sm:$0xff] }
  0x14   :  { %116 = vmatpush.msra.mxu0 %v102_v4  ;;  %139 = vmatpush.msra.mxu1 %v103_v5  ;;  %v92_v14 = vld [vmem:[#allocation6 + $0x80] sm:$0xff]  ;;  %v93_v15 = vld [vmem:[#allocation6 + $0x88] sm:$0xff]  ;;  %v90_v16 = vld [vmem:[#allocation6 + $0x70] sm:$0xff] }
  0x15   :  { %v91_v17 = vld [vmem:[#allocation6 + $0x78] sm:$0xff]  ;;  %v88_v18 = vld [vmem:[#allocation6 + $0x60] sm:$0xff]  ;;  %v89_v19 = vld [vmem:[#allocation6 + $0x68] sm:$0xff] }
  0x16   :  { %117 = vmatpush.msra.mxu0 %v100_v6  ;;  %140 = vmatpush.msra.mxu1 %v101_v7  ;;  %v86_v20 = vld [vmem:[#allocation6 + $0x50] sm:$0xff]  ;;  %v87_v21 = vld [vmem:[#allocation6 + $0x58] sm:$0xff]  ;;  %v84_v22 = vld [vmem:[#allocation6 + $0x40] sm:$0xff] }
  0x17   :  { %v85_v23 = vld [vmem:[#allocation6 + $0x48] sm:$0xff]  ;;  %v82_v24 = vld [vmem:[#allocation6 + $0x30] sm:$0xff]  ;;  %v83_v25 = vld [vmem:[#allocation6 + $0x38] sm:$0xff] }
  0x18   :  { %118 = vmatpush.msra.mxu0 %v98_v8  ;;  %141 = vmatpush.msra.mxu1 %v99_v9  ;;  %v80_v26 = vld [vmem:[#allocation6 + $0x20] sm:$0xff]  ;;  %v81_v27 = vld [vmem:[#allocation6 + $0x28] sm:$0xff]  ;;  %v78_v28 = vld [vmem:[#allocation6 + $0x10] sm:$0xff] }
  0x19   :  { %v79_v29 = vld [vmem:[#allocation6 + $0x18] sm:$0xff]  ;;  %v76_v30 = vld [vmem:[#allocation6] sm:$0xff]  ;;  %v77_v31 = vld [vmem:[#allocation6 + $0x8] sm:$0xff] }
  0x1a   :  { %119 = vmatpush.msra.mxu0 %v96_v10  ;;  %142 = vmatpush.msra.mxu1 %v97_v11  ;;  %v74_v32 = vld [vmem:[#allocation3] sm:$0xff]  ;;  %v75_v33 = vld [vmem:[#allocation3 + $0x8] sm:$0xff]  ;;  %v351_v39 = vld [vmem:[#allocation8 + $0x68] sm:$0xff] }
  0x1b   :  { %v353_v34 = vld [vmem:[#allocation8 + $0x78] sm:$0xff]  ;;  %v352_v36 = vld [vmem:[#allocation8 + $0x70] sm:$0xff]  ;;  %v367_v40 = vld [vmem:[#allocation8 + $0xe8] sm:$0xff] }
  0x1c   :  { %120 = vmatpush.msra.mxu0 %v94_v12  ;;  %143 = vmatpush.msra.mxu1 %v95_v13  ;;  %v369_v35 = vld [vmem:[#allocation8 + $0xf8] sm:$0xff]  ;;  %v368_v37 = vld [vmem:[#allocation8 + $0xf0] sm:$0xff]  ;;  %v350_v43 = vld [vmem:[#allocation8 + $0x60] sm:$0xff] }
  0x1d   :  { %370 = vmatpush.msra.mxu2 %v353_v34  ;;  %393 = vmatpush.msra.mxu3 %v369_v35  ;;  %v108_v38 = vld [vmem:[%s741_s2] sm:$0x3]  ;;  %v366_v44 = vld [vmem:[#allocation8 + $0xe0] sm:$0xff]  ;;  %v349_v45 = vld [vmem:[#allocation8 + $0x58] sm:$0xff] }
  0x1e   :  { %121 = vmatpush.msra.mxu0 %v92_v14  ;;  %144 = vmatpush.msra.mxu1 %v93_v15  ;;  %v110_v41 = vperm.slane %v108_v38, 0  ;;  %v111_v42 = vperm.slane %v108_v38, 1  ;;  %v365_v46 = vld [vmem:[#allocation8 + $0xd8] sm:$0xff]  ;;  %v348_v51 = vld [vmem:[#allocation8 + $0x50] sm:$0xff]  ;;  %v347_v55 = vld [vmem:[#allocation8 + $0x48] sm:$0xff] }
  0x1f   :  { %371 = vmatpush.msra.mxu2 %v352_v36  ;;  %394 = vmatpush.msra.mxu3 %v368_v37  ;;  %v364_v52 = vld [vmem:[#allocation8 + $0xd0] sm:$0xff]  ;;  %v363_v56 = vld [vmem:[#allocation8 + $0xc8] sm:$0xff]  ;;  %v346_v59 = vld [vmem:[#allocation8 + $0x40] sm:$0xff] }
  0x20   :  { %122 = vmatpush.msra.mxu0 %v90_v16  ;;  %145 = vmatpush.msra.mxu1 %v91_v17  ;;  %v362_v60 = vld [vmem:[#allocation8 + $0xc0] sm:$0xff]  ;;  %v345_v61 = vld [vmem:[#allocation8 + $0x38] sm:$0xff]  ;;  %v344_v3 = vld [vmem:[#allocation8 + $0x30] sm:$0xff] }
  0x21   :  { %372 = vmatpush.msra.mxu2 %v351_v39  ;;  %395 = vmatpush.msra.mxu3 %v367_v40  ;;  %v361_v62 = vld [vmem:[#allocation8 + $0xb8] sm:$0xff]  ;;  %v360_v4 = vld [vmem:[#allocation8 + $0xb0] sm:$0xff]  ;;  %v343_v9 = vld [vmem:[#allocation8 + $0x28] sm:$0xff] }
  0x22   :  { %123 = vmatpush.msra.mxu0 %v88_v18  ;;  %146 = vmatpush.msra.mxu1 %v89_v19  ;;  %v359_v10 = vld [vmem:[#allocation8 + $0xa8] sm:$0xff]  ;;  %v342_v16 = vld [vmem:[#allocation8 + $0x20] sm:$0xff] }
  0x23   :  { %373 = vmatpush.msra.mxu2 %v350_v43  ;;  %396 = vmatpush.msra.mxu3 %v366_v44  ;;  %v358_v17 = vld [vmem:[#allocation8 + $0xa0] sm:$0xff]  ;;  %v339_v38 = vld [vmem:[#allocation8 + $0x8] sm:$0xff] }
  0x24   :  { %124 = vmatpush.msra.mxu0 %v86_v20  ;;  %147 = vmatpush.msra.mxu1 %v87_v21  ;;  %v355_v39 = vld [vmem:[#allocation8 + $0x88] sm:$0xff] }
  0x25   :  { %374 = vmatpush.msra.mxu2 %v349_v45  ;;  %397 = vmatpush.msra.mxu3 %v365_v46  ;;  %v338_v46 = vld [vmem:[#allocation8] sm:$0xff] }
  0x26   :  { %125 = vmatpush.msra.mxu0 %v84_v22  ;;  %148 = vmatpush.msra.mxu1 %v85_v23 }
  0x27   :  { %375 = vmatpush.msra.mxu2 %v348_v51  ;;  %398 = vmatpush.msra.mxu3 %v364_v52 }
  0x28   :  { %126 = vmatpush.msra.mxu0 %v82_v24  ;;  %149 = vmatpush.msra.mxu1 %v83_v25  ;;  %v341_v24 = vld [vmem:[#allocation8 + $0x18] sm:$0xff] }
  0x29   :  { %376 = vmatpush.msra.mxu2 %v347_v55  ;;  %399 = vmatpush.msra.mxu3 %v363_v56  ;;  %v357_v25 = vld [vmem:[#allocation8 + $0x98] sm:$0xff] }
  0x2a   :  { %127 = vmatpush.msra.mxu0 %v80_v26  ;;  %150 = vmatpush.msra.mxu1 %v81_v27 }
  0x2b   :  { %377 = vmatpush.msra.mxu2 %v346_v59  ;;  %400 = vmatpush.msra.mxu3 %v362_v60 }
  0x2c   :  { %128 = vmatpush.msra.mxu0 %v78_v28  ;;  %151 = vmatpush.msra.mxu1 %v79_v29 }
  0x2d   :  { %378 = vmatpush.msra.mxu2 %v345_v61  ;;  %401 = vmatpush.msra.mxu3 %v361_v62 }
  0x2e   :  { %129 = vmatpush.msra.mxu0 %v76_v30  ;;  %152 = vmatpush.msra.mxu1 %v77_v31 }
  0x2f   :  { %130 = vmatmul.f32.vlgmr.msra.gmra.mxu0 %v74_v32  ;;  %153 = vmatmul.f32.vlgmr.msra.gmra.mxu1 %v74_v32  ;;  %v340_v32 = vld [vmem:[#allocation8 + $0x10] sm:$0xff] }
  0x30   :  { %379 = vmatpush.msra.mxu2 %v344_v3  ;;  %402 = vmatpush.msra.mxu3 %v360_v4 }
  0x32   :  { %380 = vmatpush.msra.mxu2 %v343_v9  ;;  %403 = vmatpush.msra.mxu3 %v359_v10 }
  0x34   :  { %381 = vmatpush.msra.mxu2 %v342_v16  ;;  %404 = vmatpush.msra.mxu3 %v358_v17 }
  0x36   :  { %382 = vmatpush.msra.mxu2 %v341_v24  ;;  %405 = vmatpush.msra.mxu3 %v357_v25 }
  0x37   :  { %133 = vmatmul.f32.gmra.mxu0 %v75_v33  ;;  %156 = vmatmul.f32.gmra.mxu1 %v75_v33  ;;  %v356_v33 = vld [vmem:[#allocation8 + $0x90] sm:$0xff] }
  0x38   :  { %383 = vmatpush.msra.mxu2 %v340_v32  ;;  %406 = vmatpush.msra.mxu3 %v356_v33 }
  0x3a   :  { %384 = vmatpush.msra.mxu2 %v339_v38  ;;  %407 = vmatpush.msra.mxu3 %v355_v39 }
  0x3c   :  { %385 = vmatpush.msra.mxu2 %v338_v46 }
  0xac   :  { %v131_v47 = vpop.f32.mrf.mxu0  ;;  %v154_v48 = vpop.f32.mrf.mxu1 }
  0xad   :  { %v632_v49 = vadd.f32 %v131_v47, %v110_v41  ;;  %v634_v50 = vadd.f32 %v154_v48, %v111_v42  ;;  %v354_v47 = vld [vmem:[#allocation8 + $0x80] sm:$0xff] }
  0xae   :  { %408 = vmatpush.msra.mxu3 %v354_v47 }
  0xaf   :  { %v637_v53 = vmul.f32 0.70710677, %v632_v49  ;;  %v640_v54 = vmul.f32 0.70710677, %v634_v50 }
  0xb1   :  { %v168_v57 = vmul.f32 %v637_v53, %v637_v53  ;;  %v208_v58 = vmul.f32 %v640_v54, %v640_v54 }
  0xb3   :  { %v646_v63 = vmin.f32 %v168_v57, 16.0  ;;  %v648_v0 = vmin.f32 %v208_v58, 16.0 }
  0xb4   :  { %v134_v1 = vpop.f32.mrf.mxu0  ;;  %v157_v2 = vpop.f32.mrf.mxu1 }
  0xb5   :  { %v170_v5 = vmul.f32 2.1237322e-06, %v646_v63  ;;  %v210_v6 = vmul.f32 2.1237322e-06, %v648_v0  ;;  %v652_v7 = vadd.f32 %v134_v1, %v110_v41  ;;  %v654_v8 = vadd.f32 %v157_v2, %v111_v42 }
  0xb6   :  { %v181_v11 = vmul.f32 3.8918573e-05, %v646_v63  ;;  %v221_v21 = vmul.f32 3.8918573e-05, %v648_v0 }
  0xb7   :  { %v171_v12 = vadd.f32 0.00028619796, %v170_v5  ;;  %v211_v13 = vadd.f32 0.00028619796, %v210_v6  ;;  %v658_v14 = vmul.f32 0.70710677, %v652_v7 }
  0xb8   :  { %v661_v15 = vmul.f32 0.70710677, %v654_v8  ;;  %v182_v20 = vadd.f32 0.001143296, %v181_v11  ;;  %v222_v29 = vadd.f32 0.001143296, %v221_v21 }
  0xb9   :  { %v172_v18 = vmul.f32 %v171_v12, %v646_v63  ;;  %v212_v19 = vmul.f32 %v211_v13, %v648_v0  ;;  %v248_v22 = vmul.f32 %v658_v14, %v658_v14 }
  0xba   :  { %v288_v23 = vmul.f32 %v661_v15, %v661_v15  ;;  %v183_v28 = vmul.f32 %v182_v20, %v646_v63  ;;  %v223_v36 = vmul.f32 %v222_v29, %v648_v0 }
  0xbb   :  { %v173_v26 = vadd.f32 0.0036580483, %v172_v18  ;;  %v213_v27 = vadd.f32 0.0036580483, %v212_v19  ;;  %v671_v30 = vmin.f32 %v248_v22, 16.0 }
  0xbc   :  { %v673_v31 = vmin.f32 %v288_v23, 16.0  ;;  %v184_v35 = vadd.f32 0.014752088, %v183_v28  ;;  %v224_v44 = vadd.f32 0.014752088, %v223_v36 }
  0xbd   :  { %v174_v34 = vmul.f32 %v173_v26, %v646_v63  ;;  %v250_v37 = vmul.f32 2.1237322e-06, %v671_v30  ;;  %v261_v40 = vmul.f32 3.8918573e-05, %v671_v30  ;;  %v214_v41 = vmul.f32 %v213_v27, %v648_v0 }
  0xbe   :  { %v290_v42 = vmul.f32 2.1237322e-06, %v673_v31  ;;  %v185_v43 = vmul.f32 %v184_v35, %v646_v63  ;;  %v225_v55 = vmul.f32 %v224_v44, %v648_v0  ;;  %v301_v58 = vmul.f32 3.8918573e-05, %v673_v31 }
  0xbf   :  { %v251_v45 = vadd.f32 0.00028619796, %v250_v37  ;;  %v262_v48 = vadd.f32 0.001143296, %v261_v40  ;;  %v175_v51 = vadd.f32 0.05243302, %v174_v34 }
  0xc0   :  { %v186_v52 = vadd.f32 0.112945676, %v185_v43  ;;  %v215_v59 = vadd.f32 0.05243302, %v214_v41  ;;  %v291_v60 = vadd.f32 0.00028619796, %v290_v42 }
  0xc1   :  { %v252_v56 = vmul.f32 %v251_v45, %v671_v30  ;;  %v263_v57 = vmul.f32 %v262_v48, %v671_v30  ;;  %v226_v62 = vadd.f32 0.112945676, %v225_v55  ;;  %v176_v3 = vmul.f32 %v175_v51, %v646_v63 }
  0xc2   :  { %v187_v61 = vmul.f32 %v186_v52, %v646_v63  ;;  %v302_v9 = vadd.f32 0.001143296, %v301_v58  ;;  %v216_v10 = vmul.f32 %v215_v59, %v648_v0  ;;  %v292_v11 = vmul.f32 %v291_v60, %v673_v31 }
  0xc3   :  { %v253_v1 = vadd.f32 0.0036580483, %v252_v56  ;;  %v264_v2 = vadd.f32 0.014752088, %v263_v57  ;;  %v227_v5 = vmul.f32 %v226_v62, %v648_v0  ;;  %v177_v19 = vadd.f32 0.18741608, %v176_v3 }
  0xc4   :  { %v188_v4 = vadd.f32 0.4994258, %v187_v61  ;;  %v303_v18 = vmul.f32 %v302_v9, %v673_v31  ;;  %v217_v24 = vadd.f32 0.18741608, %v216_v10  ;;  %v293_v25 = vadd.f32 0.0036580483, %v292_v11 }
  0xc5   :  { %v265_v6 = vmul.f32 %v264_v2, %v671_v30  ;;  %v228_v13 = vadd.f32 0.4994258, %v227_v5  ;;  %v254_v16 = vmul.f32 %v253_v1, %v671_v30  ;;  %v178_v29 = vmul.f32 %v177_v19, %v646_v63 }
  0xc6   :  { %v189_v12 = vmul.f32 %v188_v4, %v646_v63  ;;  %v304_v23 = vadd.f32 0.014752088, %v303_v18  ;;  %v218_v33 = vmul.f32 %v217_v24, %v648_v0  ;;  %v294_v34 = vmul.f32 %v293_v25, %v673_v31 }
  0xc7   :  { %v266_v17 = vadd.f32 0.112945676, %v265_v6  ;;  %v229_v21 = vmul.f32 %v228_v13, %v648_v0  ;;  %v255_v26 = vadd.f32 0.05243302, %v254_v16  ;;  %v179_v39 = vadd.f32 1.1283791, %v178_v29 }
  0xc8   :  { %v190_v20 = vadd.f32 1.0, %v189_v12  ;;  %v305_v28 = vmul.f32 %v304_v23, %v673_v31  ;;  %v219_v43 = vadd.f32 1.1283791, %v218_v33  ;;  %v295_v63 = vadd.f32 0.05243302, %v294_v34 }
  0xc9   :  { %v267_v22 = vmul.f32 %v266_v17, %v671_v30  ;;  %v230_v27 = vadd.f32 1.0, %v229_v21  ;;  %v256_v37 = vmul.f32 %v255_v26, %v671_v30  ;;  %v180_v47 = vmul.f32 %v179_v39, %v637_v53 }
  0xca   :  { %466 = vrcp.f32 %v190_v20  ;;  %v306_v36 = vadd.f32 0.112945676, %v305_v28  ;;  %v202_v48 = vand.u32 2147483648, %v190_v20  ;;  %v200_v55 = vand.u32 2147483647, %v190_v20 }
  0xcb   :  { %v268_v32 = vadd.f32 0.4994258, %v267_v22  ;;  %468 = vrcp.f32 %v230_v27  ;;  %v257_v0 = vadd.f32 0.18741608, %v256_v37  ;;  %v220_v57 = vmul.f32 %v219_v43, %v640_v54 }
  0xcc   :  { %v307_v41 = vmul.f32 %v306_v36, %v673_v31  ;;  %v296_v58 = vmul.f32 %v295_v63, %v673_v31  ;;  %vm196_vm1 = vweird.f32 %v190_v20  ;;  %v242_v62 = vand.u32 2147483648, %v230_v27 }
  0xcd   :  { %v269_v35 = vmul.f32 %v268_v32, %v671_v30  ;;  %v258_v60 = vmul.f32 %v257_v0, %v671_v30  ;;  %v203_v2 = vor.u32 1.1754944e-38, %v202_v48  ;;  %v240_v4 = vand.u32 2147483647, %v230_v27 }
  0xce   :  { %v308_v46 = vadd.f32 0.4994258, %v307_v41  ;;  %vm201_vm4 = vcmp.eq.f32.partialorder %v200_v55, 8.507059e+37  ;;  %v297_v6 = vadd.f32 0.18741608, %v296_v58  ;;  %vm236_vm5 = vweird.f32 %v230_v27 }
  0xcf   :  { %v703_v40 = vadd.f32 1.0, %v269_v35  ;;  %v259_v30 = vadd.f32 1.1283791, %v258_v60  ;;  %v243_v12 = vor.u32 1.1754944e-38, %v242_v62  ;;  %vm241_vm7 = vcmp.eq.f32.partialorder %v240_v4, 8.507059e+37 }
  0xd0   :  { %v467_v38 = vpop.eup %466  ;;  %v309_v56 = vmul.f32 %v308_v46, %v673_v31  ;;  %v160_v22 = vmul.f32 0.5, %v632_v49  ;;  %v298_v25 = vmul.f32 %v297_v6, %v673_v31  ;;  %v161_v49 = vmul.f32 0.5, %v634_v50 }
  0xd1   :  { %v192_v42 = vmul.f32 %v467_v38, %v190_v20  ;;  %470 = vrcp.f32 %v703_v40  ;;  %v469_v44 = vpop.eup %468  ;;  %vm197_vm0 = vweird.f32 %v467_v38  ;;  %v280_v17 = vand.u32 2147483647, %v703_v40 }
  0xd2   :  { %v232_v51 = vmul.f32 %v469_v44, %v230_v27  ;;  %v712_v1 = vadd.f32 1.0, %v309_v56  ;;  %vm198_vm2 = vmor %vm196_vm1, %vm197_vm0  ;;  %vm237_vm3 = vweird.f32 %v469_v44  ;;  %v282_v18 = vand.u32 2147483648, %v703_v40 }
  0xd3   :  { %v193_v45 = vsub.f32 1.0, %v192_v42  ;;  %vm238_vm6 = vmor %vm236_vm5, %vm237_vm3  ;;  %vm276_vm9 = vweird.f32 %v703_v40  ;;  %v260_v33 = vmul.f32 %v259_v30, %v658_v14  ;;  %vm281_vm11 = vcmp.eq.f32.partialorder %v280_v17, 8.507059e+37 }
  0xd4   :  { %v233_v59 = vsub.f32 1.0, %v232_v51  ;;  %472 = vrcp.f32 %v712_v1  ;;  %v283_v29 = vor.u32 1.1754944e-38, %v282_v18  ;;  %v299_v31 = vadd.f32 1.1283791, %v298_v25 }
  0xd5   :  { %v194_v52 = vmul.f32 %v467_v38, %v193_v45  ;;  %v320_v43 = vand.u32 2147483647, %v712_v1  ;;  %vm316_vm13 = vweird.f32 %v712_v1  ;;  %v162_v50 = vmul.f32 0.5, %v652_v7  ;;  %v465_v7 = vld [vmem:[%s743_s4] ss:$0 sm:$0xff] }
  0xd6   :  { %v234_v3 = vmul.f32 %v469_v44, %v233_v59  ;;  %v300_v45 = vmul.f32 %v299_v31, %v661_v15  ;;  %v163_v55 = vmul.f32 0.5, %v654_v8 }
  0xd7   :  { %v195_v61 = vadd.f32 %v467_v38, %v194_v52  ;;  %v471_v53 = vpop.eup %470  ;;  %vm321_vm15 = vcmp.eq.f32.partialorder %v320_v43, 8.507059e+37 }
  0xd8   :  { %v272_v54 = vmul.f32 %v471_v53, %v703_v40  ;;  %v235_v10 = vadd.f32 %v469_v44, %v234_v3  ;;  %vm277_vm8 = vweird.f32 %v471_v53  ;;  %v322_v40 = vand.u32 2147483648, %v712_v1 }
  0xd9   :  { %v199_v5 = vsel %vm198_vm2, %v467_v38, %v195_v61  ;;  %vm278_vm10 = vmor %vm276_vm9, %vm277_vm8 }
  0xda   :  { %v204_v9 = vsel %vm201_vm4, %v203_v2, %v199_v5  ;;  %v273_v13 = vsub.f32 1.0, %v272_v54  ;;  %v239_v16 = vsel %vm238_vm6, %v469_v44, %v235_v10  ;;  %v473_v24 = vpop.eup %472  ;;  %v323_v0 = vor.u32 1.1754944e-38, %v322_v40 }
  0xdb   :  { %v205_v11 = vmul.f32 %v204_v9, %v180_v47  ;;  %v244_v20 = vsel %vm241_vm7, %v243_v12, %v239_v16  ;;  %v312_v32 = vmul.f32 %v473_v24, %v712_v1  ;;  %vm317_vm12 = vweird.f32 %v473_v24 }
  0xdc   :  { %v274_v21 = vmul.f32 %v471_v53, %v273_v13  ;;  %v245_v23 = vmul.f32 %v244_v20, %v220_v57  ;;  %vm318_vm14 = vmor %vm316_vm13, %vm317_vm12 }
  0xdd   :  { %v453_v19 = vclamps-f32 %v205_v11, 1.0  ;;  %v313_v38 = vsub.f32 1.0, %v312_v32 }
  0xde   :  { %v275_v27 = vadd.f32 %v471_v53, %v274_v21  ;;  %v454_v28 = vclamps-f32 %v245_v23, 1.0 }
  0xdf   :  { %v328_v26 = vadd.f32 1.0, %v453_v19  ;;  %v314_v42 = vmul.f32 %v473_v24, %v313_v38 }
  0xe0   :  { %v279_v35 = vsel %vm278_vm10, %v471_v53, %v275_v27  ;;  %v329_v36 = vadd.f32 1.0, %v454_v28 }
  0xe1   :  { %v332_v34 = vmul.f32 %v328_v26, %v160_v22  ;;  %v284_v37 = vsel %vm281_vm11, %v283_v29, %v279_v35  ;;  %v315_v14 = vadd.f32 %v473_v24, %v314_v42 }
  0xe2   :  { %v285_v39 = vmul.f32 %v284_v37, %v260_v33  ;;  %v333_v41 = vmul.f32 %v329_v36, %v161_v49 }
  0xe3   :  { %386 = vmatmul.f32.vlgmr.msra.gmra.mxu2 %v332_v34  ;;  %v319_v46 = vsel %vm318_vm14, %v473_v24, %v315_v14 }
  0xe4   :  { %v455_v63 = vclamps-f32 %v285_v39, 1.0  ;;  %409 = vmatmul.f32.vlgmr.msra.gmra.mxu3 %v333_v41  ;;  %v324_v48 = vsel %vm321_vm15, %v323_v0, %v319_v46 }
  0xe5   :  { %v325_v51 = vmul.f32 %v324_v48, %v300_v45 }
  0xe6   :  { %v330_v44 = vadd.f32 1.0, %v455_v63 }
  0xe7   :  { %v456_v52 = vclamps-f32 %v325_v51, 1.0 }
  0xe8   :  { %v334_v47 = vmul.f32 %v330_v44, %v162_v50 }
  0xe9   :  { %v331_v56 = vadd.f32 1.0, %v456_v52 }
  0xeb   :  { %389 = vmatmul.f32.gmra.mxu2 %v334_v47  ;;  %v335_v57 = vmul.f32 %v331_v56, %v163_v55 }
  0xed   :  { %412 = vmatmul.f32.gmra.mxu3 %v335_v57 }
 0x166   :  { %v387_v58 = vpop.f32.mrf.mxu2 }
 0x167   :  { %v410_v59 = vpop.f32.mrf.mxu3 }
 0x168   :  { %v411_v60 = vadd.f32 %v410_v59, %v387_v58 }
 0x16a   :  { %v429_v15 = vadd.f32 %v465_v7, %v411_v60 }
 0x16c   :  { %431 = vst [vmem:[#allocation9] sm:$0xff] %v429_v15 }
 0x16e   :  { %v390_v61 = vpop.f32.mrf.mxu2 }
 0x170   :  { %v413_v62 = vpop.f32.mrf.mxu3 }
 0x171   :  { %v414_v8 = vadd.f32 %v413_v62, %v390_v61 }
 0x173   :  { %v430_v1 = vadd.f32 %v465_v7, %v414_v8 }
 0x175   :  { %432 = vst [vmem:[#allocation9 + $0x8] sm:$0xff] %v430_v1 }
 0x176   :  { %445 = dma.vmem_to_hbm [thread:$0]  %s438_s13, 256, %s440_s16, [#allocation5], %s580_s30, %s580_s30, %s581_s6  }
 0x177   :  { %574 = dma.done.wait [#allocation5], 256  }
 0x178   :  { %575 = vsyncadd [#allocation5], 4294967040 }
 0x179   :  { %450 = vsyncpa [#allocation4], 1 }
 0x17a   :  { %451 = vsyncpa [#allocation7], 1 }
 0x17b   :  { %452 = vsyncpa [#allocation5], 1 }

</bundles_post_ra>
